<compile_context>
chip_gen: v7x
topology: tpu7x:2x2x1
jax: 0.10.0
libtpu: 0.0.40
codegen_flags: <defaults>
</compile_context>

<pallas_src>
import jax
import jax.numpy as jnp
import numpy as np
from jax.experimental import pallas as pl
from jax.experimental.pallas import tpu as pltpu

_ACT_IDS = {"none": 0, "relu": 1, "tanh": 2}


def _act_id(a):
    if a is None:
        return 0
    if isinstance(a, str):
        return _ACT_IDS[a.lower()]
    # TODO(synk): arbitrary activation callables are not supported.
    raise NotImplementedError(f"unsupported activation: {a!r}")


def _round_up(x: int, m: int) -> int:
    return ((x + m - 1) // m) * m


def _sublane(dtype) -> int:
    # f32 -> 8, bf16 -> 16, int8/fp8 -> 32 (native sublane packing).
    return max(8, 32 // jnp.dtype(dtype).itemsize)


# ----------------------------------------------------------------------------
# Kernels
# ----------------------------------------------------------------------------
def _apply_act_and_store(o_ref, y, aid_ref, code):
    """o_ref = act(y), activation chosen by per-tile `code` (SMEM scalar).

    code: 0 identity, 1 whole-tile relu, 2 whole-tile tanh,
          3 mixed tile (per-column select via aid_ref).  Exactly one fires.
    """
    @pl.when(code == 0)
    def _():
        o_ref[...] = y.astype(o_ref.dtype)

    @pl.when(code == 1)
    def _():
        o_ref[...] = jnp.maximum(y, 0.0).astype(o_ref.dtype)

    @pl.when(code == 2)
    def _():
        o_ref[...] = jnp.tanh(y).astype(o_ref.dtype)

    @pl.when(code == 3)
    def _():
        aid = aid_ref[...]                                   # (1, tn) int32
        z = jnp.where(aid == 1, jnp.maximum(y, 0.0), y)
        z = jnp.where(aid == 2, jnp.tanh(z), z)
        o_ref[...] = z.astype(o_ref.dtype)


def _fused_kernel_single_k(codes_ref, x_ref, w_ref, b_ref, aid_ref, o_ref):
    """Whole contraction in one step: no accumulator scratch, no zero-init."""
    y = jnp.dot(x_ref[...], w_ref[...], preferred_element_type=jnp.float32)
    y = y + b_ref[...].astype(jnp.float32)                   # (tm,tn)+(1,tn)
    _apply_act_and_store(o_ref, y, aid_ref, codes_ref[pl.program_id(1)])


def _fused_kernel_multi_k(codes_ref, x_ref, w_ref, b_ref, aid_ref, o_ref,
                          acc_ref):
    """K split over the grid: f32 VMEM accumulator + init/finalize via pl.when."""
    k = pl.program_id(2)

    @pl.when(k == 0)
    def _():
        acc_ref[...] = jnp.zeros_like(acc_ref)

    acc_ref[...] += jnp.dot(x_ref[...], w_ref[...],
                            preferred_element_type=jnp.float32)

    @pl.when(k == pl.num_programs(2) - 1)
    def _():
        y = acc_ref[...] + b_ref[...].astype(jnp.float32)
        _apply_act_and_store(o_ref, y, aid_ref, codes_ref[pl.program_id(1)])


# ----------------------------------------------------------------------------
# Module wrapper (fusion + padding hoisted to __init__)
# ----------------------------------------------------------------------------
class ParallelLayersPallas:
    _MAX_SINGLE_K = 1024                    # largest Kp handled in one k-step
    _TN_CANDIDATES = (512, 256, 128)        # lane-tile candidates
    _TM_CANDIDATES = (512, 384, 256, 128, 64)

    def __init__(self, weights, biases, activations=None):
        """weights[i]: (in_features, out_i) — torch weight (out_i,in) transposed.
        biases[i]: (out_i,) or (1, out_i).  activations: list of None/'relu'/'tanh'.
        """
        L = len(weights)
        if activations is None:
            activations = [None] * L
        act_ids = [_act_id(a) for a in activations]

        K = int(weights[0].shape[0])
        outs = [int(w.shape[1]) for w in weights]
        total = sum(outs)
        w_dtype = jnp.asarray(weights[0]).dtype

        # Group layers by activation so (almost) every lane tile has one
        # activation; remember each layer's slice in the fused output.
        order = sorted(range(L), key=lambda i: act_ids[i])
        self._slices = [None] * L
        off = 0
        for i in order:
            self._slices[i] = (off, outs[i])
            off += outs[i]

        w_cat = jnp.concatenate([jnp.asarray(weights[i]) for i in order], axis=1)
        b_cat = jnp.concatenate(
            [jnp.asarray(biases[i]).reshape(1, -1) for i in order], axis=1)
        aid_np = np.concatenate(
            [np.full((outs[i],), act_ids[i], np.int32) for i in order])

        # --- static K/N padding & contraction tiling (computed ONCE) --------
        sub_w = _sublane(w_dtype)
        Kp_min = _round_up(K, sub_w)
        if Kp_min <= self._MAX_SINGLE_K:
            Kp = tk = Kp_min                       # single k-step
        else:
            Kp = _round_up(K, 128)                 # <=127 elements of K padding
            tk = next(c for c in (1024, 512, 256, 128) if Kp % c == 0)
        Np = _round_up(total, 128)

        self.in_features = K
        self.out_features = list(outs)
        self.K, self.Kp, self.tk, self.gk = K, Kp, tk, Kp // tk
        self.total, self.Np = total, Np

        # Fused, padded parameters live in HBM once (no per-call concat/pad).
        self.w_p = jnp.pad(w_cat, ((0, Kp - K), (0, Np - total)))
        self.b_p = jnp.pad(b_cat, ((0, 0), (0, Np - total)))
        aid_full = np.zeros((Np,), np.int32)
        aid_full[:total] = aid_np
        self.aid_p = jnp.asarray(aid_full.reshape(1, Np))

        # Per-lane-tile activation code for every legal tn (precomputed).
        self._tn_opts = [c for c in self._TN_CANDIDATES if c <= Np and Np % c == 0]
        self._codes_np, self._codes = {}, {}
        for tn in self._tn_opts:
            gn = Np // tn
            codes = np.zeros((gn,), np.int32)
            for j in range(gn):
                lo, hi = j * tn, min((j + 1) * tn, total)
                if hi <= lo:
                    codes[j] = 0                       # all-padding tile
                else:
                    seg = aid_np[lo:hi]
                    codes[j] = int(seg[0]) if np.all(seg == seg[0]) else 3
            self._codes_np[tn] = codes
            self._codes[tn] = jnp.asarray(codes)

    def __len__(self):
        return len(self._slices)

    def __call__(self, x):
        B, K = x.shape
        assert K == self.K, (K, self.K)
        dtype = x.dtype
        sub_x = _sublane(dtype)

        # --- per-call M tiling: minimize padding, tie-break larger tile ------
        Mb = _round_up(B, sub_x)
        if Mb <= 512:
            tm, Mp = Mb, Mb
        else:
            best = None
            for cand in self._TM_CANDIDATES:
                if cand % sub_x:
                    continue
                Mp_c = _round_up(Mb, cand)
                key = (Mp_c, -cand)
                if best is None or key < best[0]:
                    best = (key, cand, Mp_c)
            _, tm, Mp = best
        gm = Mp // tm

        # --- lane tiling: biggest legal tile; keep >=2 parallel tiles when ---
        # the batch axis has only one (so v7x's two TensorCores both work).
        tn = self._tn_opts[0]
        if gm == 1 and self.Np // tn == 1 and self.Np >= 256:
            tn = 128
        gn = self.Np // tn
        codes = self._codes[tn]
        codes_np = self._codes_np[tn]

        # --- pad x (only per-call data prep) ---------------------------------
        if Mp != B or self.Kp != K:
            x_p = jnp.pad(x, ((0, Mp - B), (0, self.Kp - K)))
        else:
            x_p = x

        itemsize = jnp.dtype(dtype).itemsize
        n_trans_cols = tn * int(np.sum((codes_np == 2) | (codes_np == 3)))
        cost = pl.CostEstimate(
            flops=2 * Mp * self.Kp * self.Np,
            transcendentals=Mp * n_trans_cols,
            bytes_accessed=itemsize * (Mp * self.Kp + self.Kp * self.Np
                                       + self.Np + Mp * self.Np) + 4 * self.Np,
        )

        if self.gk == 1:
            grid = (gm, gn)
            kernel = _fused_kernel_single_k
            Kp = self.Kp
            in_specs = [
                pl.BlockSpec((tm, Kp), lambda i, j, c: (i, 0)),   # x
                pl.BlockSpec((Kp, tn), lambda i, j, c: (0, j)),   # W (fused)
                pl.BlockSpec((1, tn), lambda i, j, c: (0, j)),    # bias
                pl.BlockSpec((1, tn), lambda i, j, c: (0, j)),    # act ids
            ]
            out_spec = pl.BlockSpec((tm, tn), lambda i, j, c: (i, j))
            scratch = []
            semantics = ("parallel", "parallel")
        else:
            grid = (gm, gn, self.gk)
            kernel = _fused_kernel_multi_k
            tk = self.tk
            in_specs = [
                pl.BlockSpec((tm, tk), lambda i, j, k, c: (i, k)),
                pl.BlockSpec((tk, tn), lambda i, j, k, c: (k, j)),
                pl.BlockSpec((1, tn), lambda i, j, k, c: (0, j)),
                pl.BlockSpec((1, tn), lambda i, j, k, c: (0, j)),
            ]
            out_spec = pl.BlockSpec((tm, tn), lambda i, j, k, c: (i, j))
            scratch = [pltpu.VMEM((tm, tn), jnp.float32)]
            semantics = ("parallel", "parallel", "arbitrary")

        y_full = pl.pallas_call(
            kernel,
            out_shape=jax.ShapeDtypeStruct((Mp, self.Np), dtype),
            grid_spec=pltpu.PrefetchScalarGridSpec(
                num_scalar_prefetch=1,
                grid=grid,
                in_specs=in_specs,
                out_specs=out_spec,
                scratch_shapes=scratch,
            ),
            compiler_params=pltpu.CompilerParams(
                dimension_semantics=semantics,
                vmem_limit_bytes=32 * 1024 * 1024,
            ),
            cost_estimate=cost,
        )(codes, x_p, self.w_p, self.b_p, self.aid_p)

        # Split back into the per-layer list (original order, padding removed).
        return [y_full[:B, off:off + n] for (off, n) in self._slices]


# ----------------------------------------------------------------------------
# Pure-JAX reference + demo
# ----------------------------------------------------------------------------
def _ref_forward(x, weights, biases, activations):
    outs = []
    for w, b, act in zip(weights, biases, activations):
        y = x @ w + jnp.asarray(b).reshape(1, -1)
        if act == "relu":
            y = jnp.maximum(y, 0.0)
        elif act == "tanh":
            y = jnp.tanh(y)
        outs.append(y)
    return outs


if __name__ == "__main__":
    # Module configuration (synthetic, deterministic init — no checkpoint).
    in_features = 32
    out_features_list = [16, 8, 24]
    activations_list = ["none", "relu", "tanh"]   # mirrors [None, relu, tanh]
    batch = 2

    key = jax.random.PRNGKey(0)
    key, kx = jax.random.split(key)
    x = jax.random.normal(kx, (batch, in_features), dtype=jnp.float32)

    # Deterministic init mimicking nn.Linear's U(-1/sqrt(in), 1/sqrt(in)).
    weights, biases = [], []
    bound = 1.0 / (in_features ** 0.5)
    for out_features in out_features_list:
        key, kw, kb = jax.random.split(key, 3)
        w = jax.random.uniform(kw, (in_features, out_features),
                               minval=-bound, maxval=bound, dtype=jnp.float32)
        b = jax.random.uniform(kb, (1, out_features),
                               minval=-bound, maxval=bound, dtype=jnp.float32)
        weights.append(w)
        biases.append(b)

    # Fusion / padding happens once here (hoisted out of the forward path).
    model = ParallelLayersPallas(weights, biases, activations_list)

    outs = model(x)
    outs = [jax.block_until_ready(o) for o in outs]

    refs = _ref_forward(x, weights, biases, activations_list)
    for o, r, n in zip(outs, refs, out_features_list):
        assert o.shape == (batch, n), (o.shape, (batch, n))
        assert jnp.allclose(o, r, atol=1e-5, rtol=1e-5), "mismatch vs reference"

    print("KERNEL_OK")
</pallas_src>

<mosaic_0001>
module attributes {stable_mosaic.version = 11 : i64} {
  func.func @_fused_kernel_single_k(%arg0: i32, %arg1: i32, %arg2: memref<1xi32, #tpu.memory_space<smem>>, %arg3: memref<8x32xf32, #tpu.memory_space<vmem>>, %arg4: memref<32x128xf32, #tpu.memory_space<vmem>>, %arg5: memref<1x128xf32, #tpu.memory_space<vmem>>, %arg6: memref<1x128xi32, #tpu.memory_space<vmem>>, %arg7: memref<8x128xf32, #tpu.memory_space<vmem>>) attributes {dimension_semantics = [#tpu.dimension_semantics<parallel>, #tpu.dimension_semantics<parallel>], iteration_bounds = array<i64: 1, 1>, scalar_prefetch = 1 : i64, scratch_operands = 0 : i64, tpu.core_type = #tpu.core_type<tc>, window_params = [{transform_indices = @transform_0, window_bounds = array<i64: 8, 32>}, {transform_indices = @transform_1, window_bounds = array<i64: 32, 128>}, {transform_indices = @transform_2, window_bounds = array<i64: 1, 128>}, {transform_indices = @transform_3, window_bounds = array<i64: 1, 128>}, {transform_indices = @transform_4, window_bounds = array<i64: 8, 128>}]} {
    %c0 = arith.constant 0 : index
    %c0_0 = arith.constant 0 : index
    %0 = vector.load %arg3[%c0, %c0_0] : memref<8x32xf32, #tpu.memory_space<vmem>>, vector<8x32xf32>
    %c0_1 = arith.constant 0 : index
    %c0_2 = arith.constant 0 : index
    %1 = vector.load %arg4[%c0_1, %c0_2] : memref<32x128xf32, #tpu.memory_space<vmem>>, vector<32x128xf32>
    %cst = arith.constant dense<0.000000e+00> : vector<8x128xf32>
    %2 = tpu.matmul %0, %1, %cst {dimension_numbers = #tpu.dot_dimension_numbers<[1], [0], [0], [1], [0, 0, 1, 1], [], []>} : vector<8x32xf32>, vector<32x128xf32>, vector<8x128xf32> -> vector<8x128xf32>
    %c0_3 = arith.constant 0 : index
    %c0_4 = arith.constant 0 : index
    %3 = vector.load %arg5[%c0_3, %c0_4] : memref<1x128xf32, #tpu.memory_space<vmem>>, vector<1x128xf32>
    %4 = vector.broadcast %3 : vector<1x128xf32> to vector<8x128xf32>
    %5 = arith.addf %2, %4 : vector<8x128xf32>
    %6 = arith.index_cast %arg1 : i32 to index
    %7 = memref.load %arg2[%6] : memref<1xi32, #tpu.memory_space<smem>>
    %c0_i32 = arith.constant 0 : i32
    %8 = arith.cmpi eq, %7, %c0_i32 : i32
    %9 = arith.extui %8 : i1 to i32
    %c0_i32_5 = arith.constant 0 : i32
    %10 = arith.cmpi ne, %9, %c0_i32_5 : i32
    scf.if %10 {
      %c0_9 = arith.constant 0 : index
      %c0_10 = arith.constant 0 : index
      %20 = vector.load %arg7[%c0_9, %c0_10] : memref<8x128xf32, #tpu.memory_space<vmem>>, vector<8x128xf32>
      tpu.vector_store %arg7[%c0_9, %c0_10], %5 {strides = array<i32>} : memref<8x128xf32, #tpu.memory_space<vmem>>, vector<8x128xf32>,
    } else {
    }
    %c1_i32 = arith.constant 1 : i32
    %11 = arith.cmpi eq, %7, %c1_i32 : i32
    %12 = arith.extui %11 : i1 to i32
    %c0_i32_6 = arith.constant 0 : i32
    %13 = arith.cmpi ne, %12, %c0_i32_6 : i32
    scf.if %13 {
      %cst_9 = arith.constant 0.000000e+00 : f32
      %20 = vector.broadcast %cst_9 : f32 to vector<8x128xf32>
      %21 = arith.maximumf %5, %20 : vector<8x128xf32>
      %c0_10 = arith.constant 0 : index
      %c0_11 = arith.constant 0 : index
      %22 = vector.load %arg7[%c0_10, %c0_11] : memref<8x128xf32, #tpu.memory_space<vmem>>, vector<8x128xf32>
      tpu.vector_store %arg7[%c0_10, %c0_11], %21 {strides = array<i32>} : memref<8x128xf32, #tpu.memory_space<vmem>>, vector<8x128xf32>,
    } else {
    }
    %c2_i32 = arith.constant 2 : i32
    %14 = arith.cmpi eq, %7, %c2_i32 : i32
    %15 = arith.extui %14 : i1 to i32
    %c0_i32_7 = arith.constant 0 : i32
    %16 = arith.cmpi ne, %15, %c0_i32_7 : i32
    scf.if %16 {
      %20 = math.tanh %5 : vector<8x128xf32>
      %c0_9 = arith.constant 0 : index
      %c0_10 = arith.constant 0 : index
      %21 = vector.load %arg7[%c0_9, %c0_10] : memref<8x128xf32, #tpu.memory_space<vmem>>, vector<8x128xf32>
      tpu.vector_store %arg7[%c0_9, %c0_10], %20 {strides = array<i32>} : memref<8x128xf32, #tpu.memory_space<vmem>>, vector<8x128xf32>,
    } else {
    }
    %c3_i32 = arith.constant 3 : i32
    %17 = arith.cmpi eq, %7, %c3_i32 : i32
    %18 = arith.extui %17 : i1 to i32
    %c0_i32_8 = arith.constant 0 : i32
    %19 = arith.cmpi ne, %18, %c0_i32_8 : i32
    scf.if %19 {
      %c0_9 = arith.constant 0 : index
      %c0_10 = arith.constant 0 : index
      %20 = vector.load %arg6[%c0_9, %c0_10] : memref<1x128xi32, #tpu.memory_space<vmem>>, vector<1x128xi32>
      %c1_i32_11 = arith.constant 1 : i32
      %21 = vector.broadcast %c1_i32_11 : i32 to vector<1x128xi32>
      %22 = arith.cmpi eq, %20, %21 : vector<1x128xi32>
      %cst_12 = arith.constant 0.000000e+00 : f32
      %23 = vector.broadcast %cst_12 : f32 to vector<8x128xf32>
      %24 = arith.maximumf %5, %23 : vector<8x128xf32>
      %25 = vector.shape_cast %22 : vector<1x128xi1> to vector<1x128xi1>
      %26 = vector.broadcast %25 : vector<1x128xi1> to vector<8x128xi1>
      %27 = arith.select %26, %24, %5 : vector<8x128xi1>, vector<8x128xf32>
      %c2_i32_13 = arith.constant 2 : i32
      %28 = vector.broadcast %c2_i32_13 : i32 to vector<1x128xi32>
      %29 = arith.cmpi eq, %20, %28 : vector<1x128xi32>
      %30 = math.tanh %27 : vector<8x128xf32>
      %31 = vector.shape_cast %29 : vector<1x128xi1> to vector<1x128xi1>
      %32 = vector.broadcast %31 : vector<1x128xi1> to vector<8x128xi1>
      %33 = arith.select %32, %30, %27 : vector<8x128xi1>, vector<8x128xf32>
      %c0_14 = arith.constant 0 : index
      %c0_15 = arith.constant 0 : index
      %34 = vector.load %arg7[%c0_14, %c0_15] : memref<8x128xf32, #tpu.memory_space<vmem>>, vector<8x128xf32>
      tpu.vector_store %arg7[%c0_14, %c0_15], %33 {strides = array<i32>} : memref<8x128xf32, #tpu.memory_space<vmem>>, vector<8x128xf32>,
    } else {
    }
    return
  }
  func.func @transform_0(%arg0: i32, %arg1: i32, %arg2: memref<1xi32, #tpu.memory_space<smem>>) -> (i32, i32) {
    %c0_i32 = arith.constant 0 : i32
    %c0_i32_0 = arith.constant 0 : i32
    return %arg0, %c0_i32 : i32, i32
  }
  func.func @transform_1(%arg0: i32, %arg1: i32, %arg2: memref<1xi32, #tpu.memory_space<smem>>) -> (i32, i32) {
    %c0_i32 = arith.constant 0 : i32
    %c0_i32_0 = arith.constant 0 : i32
    return %c0_i32, %arg1 : i32, i32
  }
  func.func @transform_2(%arg0: i32, %arg1: i32, %arg2: memref<1xi32, #tpu.memory_space<smem>>) -> (i32, i32) {
    %c0_i32 = arith.constant 0 : i32
    %c0_i32_0 = arith.constant 0 : i32
    return %c0_i32, %arg1 : i32, i32
  }
  func.func @transform_3(%arg0: i32, %arg1: i32, %arg2: memref<1xi32, #tpu.memory_space<smem>>) -> (i32, i32) {
    %c0_i32 = arith.constant 0 : i32
    %c0_i32_0 = arith.constant 0 : i32
    return %c0_i32, %arg1 : i32, i32
  }
  func.func @transform_4(%arg0: i32, %arg1: i32, %arg2: memref<1xi32, #tpu.memory_space<smem>>) -> (i32, i32) {
    %c0_i32 = arith.constant 0 : i32
    return %arg0, %arg1 : i32, i32
  }
}

</mosaic_0001>

<bundles_post_ra>
// kernel: tpu_custom_call.1
= control target key start
LH: loop header
LB: loop body
LE: loop exit
PB: predicated region body
PF: predicated region fallthrough
CT: control target
= control target key end

     0   :  { %11 = vsyncpa [#allocation5], 0  ;;  %s403_s0 = inlined_call_operand.<no memory space> [shape: s32[1], index: 0, kind: input, shape index: {}]   ;;  %s404_s1 = inlined_call_operand.hbm [shape: f32[8,32], index: 1, kind: input, shape index: {}]   ;;  %s405_s2 = inlined_call_operand.hbm [shape: f32[32,128], index: 2, kind: input, shape index: {}]   ;;  %s406_s3 = inlined_call_operand.vmem [shape: f32[1,128], index: 3, kind: input, shape index: {}]   ;;  %s407_s4 = inlined_call_operand.vmem [shape: s32[1,128], index: 4, kind: input, shape index: {}]   ;;  %s408_s5 = inlined_call_operand.hbm [shape: f32[8,128], index: 5, kind: output, shape index: {}]  }
   0x1   :  { %12 = vsyncpa [#allocation8], 0 }
   0x2   :  { %13 = vsyncpa [#allocation6], 0  ;;  %s303_s18 = smov [#allocation4]   ;;  %s304_s20 = smov [#allocation7]  }
   0x3   :  { %s20_s19 = sshll.u32 %s303_s18, 4  ;;  %s29_s21 = sshll.u32 %s304_s20, 4  ;;  %s21_s19 = int_to_ptr.vmem [resolvable:$true] %s20_s19  ;;  %s342_s21 = int_to_ptr.vmem [resolvable:$true] %s29_s21 }
   0x4   :  { %s231_s24 = scalar_lea.hbm %s404_s1, 128 }
   0x5   :  { %p232_p0 = scmp.ne.s32.totalorder %s404_s1, %s231_s24  ;;  %p235_p1 = scmp.lt.u32.totalorder %s231_s24, %s404_s1 }
   0x7   :  { %p237_p2 = pnand %p235_p1, %p232_p0 }
   0x9   :  { %240 = shalt.err (!%p237_p2)
}
   0xa   :  { %s241_s29 = scalar_lea.vmem %s21_s19, 128  ;;  %p246_p4 = scmp.lt.s32.totalorder %s21_s19, %s21_s19 }
   0xb   :  { %p242_p3 = scmp.ne.s32.totalorder %s21_s19, %s241_s29  ;;  %p247_p5 = scmp.lt.s32.totalorder %s241_s29, %s241_s29 }
   0xd   :  { %p248_p6 = por %p247_p5, %p246_p4 }
   0xf   :  { %p249_p7 = pnand %p248_p6, %p242_p3 }
  0x11   :  { %252 = shalt.err (!%p249_p7)
}
  0x12   :  { %23 = dma.hbm_to_vmem [thread:$0]  %s404_s1, 128, %s21_s19, [#allocation5]  }
  0x13   :  { %s253_s9 = scalar_lea.hbm %s405_s2, 512 }
  0x14   :  { %p254_p8 = scmp.ne.s32.totalorder %s405_s2, %s253_s9  ;;  %p257_p9 = scmp.lt.u32.totalorder %s253_s9, %s405_s2 }
  0x16   :  { %p259_p10 = pnand %p257_p9, %p254_p8 }
  0x18   :  { %262 = shalt.err (!%p259_p10)
}
  0x19   :  { %s263_s14 = scalar_lea.vmem %s342_s21, 512  ;;  %p268_p12 = scmp.lt.s32.totalorder %s342_s21, %s342_s21 }
  0x1a   :  { %p264_p11 = scmp.ne.s32.totalorder %s342_s21, %s263_s14  ;;  %p269_p13 = scmp.lt.s32.totalorder %s263_s14, %s263_s14 }
  0x1c   :  { %p270_p0 = por %p269_p13, %p268_p12 }
  0x1e   :  { %p271_p1 = pnand %p270_p0, %p264_p11 }
  0x20   :  { %274 = shalt.err (!%p271_p1)
}
  0x21   :  { %s305_s1 = smov 128   ;;  %s306_s15 = smov 8  }
  0x22   :  { %35 = dma.hbm_to_vmem [thread:$0]  %s405_s2, 512, %s342_s21, [#allocation8], %s305_s1, %s305_s1, %s306_s15  }
  0x23   :  { %297 = dma.done.wait [#allocation5], 128  }
  0x24   :  { %298 = vsyncadd [#allocation5], 4294967168 }
  0x25   :  { %299 = dma.done.wait [#allocation8], 512  }
  0x26   :  { %300 = vsyncadd [#allocation8], 4294966784  ;;  %v307_v0 = vmov 0.0|0.0   ;;  %vm308_vm0 = vmmov 0   ;;  %v309_v1 = vmov 0.0   ;;  %v47_v2 = vld [vmem:[#allocation7] sm:$0xff] }
  0x27   :  { %212 = vmatprep.subr.bf16.mxu0 %v307_v0  ;;  %209 = vmatprep.mubr.msk.f32.mxu0 %vm308_vm0, %v309_v1  ;;  %v48_v3 = vld [vmem:[#allocation7 + $0x8] sm:$0xff]  ;;  %v49_v4 = vld [vmem:[#allocation7 + $0x10] sm:$0xff]  ;;  %v50_v6 = vld [vmem:[#allocation7 + $0x18] sm:$0xff]  ;;  %vm58_vm1 = vcmask 261120   ;;  %p192_p2 = scmp.ne.s32.totalorder %s403_s0, 0 }
  0x28   :  { %v213_v5 = vpack.c.bf16 %v48_v3, %v47_v2  ;;  %v216_v7 = vpack.c.bf16 %v50_v6, %v49_v4  ;;  %v46_v8 = vld [vmem:[#allocation4] sm:$0xff] }
  0x29   :  { %v190_v9 = vld [vmem:[%s406_s3] ss:$0 sm:$0xff] }
  0x2a   :  { %214 = vmatpush3.bf16.msra.mxu0 %v213_v5 }
  0x2b   :  { %215 = vmatprep.subr.bf16.mxu0 %v307_v0 }
  0x2e   :  { %217 = vmatpush3.bf16.msra.mxu0 %v216_v7 }
  0x31   :  { %210 = vmatmul.mubr.msk.f32.vlgmr.msra.gmra.mrb[0].mxu0 %vm58_vm1, %v46_v8 }
  0xff   :  { %136 = sbr.rel (%p192_p2) target bundleno = 264 (0x108), region = 29 }
 0x104   :  { %v128_v10 = vpop.f32.mrb[0].mxu0 }
 0x105   :  { %v129_v11 = vadd.f32 %v190_v9, %v128_v10  ;;  %v211_v12 = vpop.f32.mrb[1].mxu0 }
 0x107   :  { %137 = vst [vmem:[#allocation9] sm:$0xff] %v129_v11 }
 0x108 PF:  { %p193_p3 = scmp.ne.s32.totalorder %s403_s0, 1 }
 0x109   :  { %v142_v13 = vmax.f32 (!%p193_p3), %v129_v11, 0.0 }
 0x10a   :  { %141 = sbr.rel (%p193_p3) target bundleno = 273 (0x111), region = 33 }
 0x10b   :  { %143 = vst [vmem:[#allocation9] sm:$0xff] (!%p193_p3), %v142_v13 }
 0x111 PF:  { %p194_p4 = scmp.ne.s32.totalorder %s403_s0, 2 }
 0x112   :  { %227 = vtanh.f32 (!%p194_p4), %v129_v11 }
 0x113   :  { %147 = sbr.rel (%p194_p4) target bundleno = 286 (0x11e), region = 37 }
 0x11c   :  { %v228_v14 = vpop.eup %227 }
 0x11d   :  { %149 = vst [vmem:[#allocation9] sm:$0xff] %v228_v14 }
 0x11e PF:  { %p195_p5 = scmp.ne.s32.totalorder %s403_s0, 3 }
 0x11f   :  { %v154_v15 = vld [vmem:[%s407_s4] sm:$0x1] (!%p195_p5)  ;;  %v158_v16 = vlaneseq (!%p195_p5)  ;;  %v310_v18 = vmov (!%p195_p5), 0   ;;  %v156_v21 = vmax.f32 (!%p195_p5), %v129_v11, 0.0 }
 0x120   :  { %153 = sbr.rel (%p195_p5) target bundleno = 310 (0x136), region = 41  ;;  %vm155_vm2 = vcmp.eq.s32.totalorder (!%p195_p5), %v154_v15, 1  ;;  %vm164_vm4 = vcmp.eq.s32.totalorder (!%p195_p5), %v154_v15, 2 }
 0x121   :  { %v159_v17 = vshrl.u32 (!%p195_p5), %v158_v16, 7  ;;  %v157_v19 = vsel (!%p195_p5), %vm155_vm2, 1, %v310_v18  ;;  %v166_v24 = vsel (!%p195_p5), %vm164_vm4, 1, %v310_v18 }
 0x123   :  { %v160_v20 = vsub.s32 (!%p195_p5), 0, %v159_v17 }
 0x125   :  { %v161_v22 = vrot.slane (!%p195_p5), %v157_v19, %v160_v20  ;;  %v170_v25 = vrot.slane (!%p195_p5), %v166_v24, %v160_v20 }
 0x127   :  { %vm162_vm3 = vcmp.eq.s32.totalorder %v161_v22, 1  ;;  %vm171_vm5 = vcmp.eq.s32.totalorder %v170_v25, 1 }
 0x128   :  { %v163_v23 = vsel %vm162_vm3, %v156_v21, %v129_v11 }
 0x129   :  { %229 = vtanh.f32 %v163_v23 }
 0x133   :  { %v230_v26 = vpop.eup %229 }
 0x134   :  { %v172_v27 = vsel %vm171_vm5, %v230_v26, %v163_v23 }
 0x135   :  { %173 = vst [vmem:[#allocation9] sm:$0xff] %v172_v27 }
 0x136 PF:  { %s311_s0 = smov [#allocation9]  }
 0x137   :  { %s180_s4 = sshll.u32 %s311_s0, 4  ;;  %s181_s4 = int_to_ptr.vmem [resolvable:$true] %s180_s4 }
 0x138   :  { %s275_s28 = scalar_lea.vmem %s181_s4, 128  ;;  %p280_p7 = scmp.lt.s32.totalorder %s181_s4, %s181_s4 }
 0x139   :  { %p276_p6 = scmp.ne.s32.totalorder %s181_s4, %s275_s28  ;;  %p281_p8 = scmp.lt.s32.totalorder %s275_s28, %s275_s28 }
 0x13b   :  { %p282_p9 = por %p281_p8, %p280_p7 }
 0x13d   :  { %p283_p10 = pnand %p282_p9, %p276_p6 }
 0x13f   :  { %286 = shalt.err (!%p283_p10)
}
 0x140   :  { %s287_s6 = scalar_lea.hbm %s408_s5, 128 }
 0x141   :  { %p288_p11 = scmp.ne.s32.totalorder %s408_s5, %s287_s6  ;;  %p291_p12 = scmp.lt.u32.totalorder %s287_s6, %s408_s5 }
 0x143   :  { %p293_p13 = pnand %p291_p12, %p288_p11 }
 0x145   :  { %296 = shalt.err (!%p293_p13)
}
 0x146   :  { %183 = dma.vmem_to_hbm [thread:$0]  %s181_s4, 128, %s408_s5, [#allocation6]  }
 0x147   :  { %301 = dma.done.wait [#allocation6], 128  }
 0x148   :  { %302 = vsyncadd [#allocation6], 4294967168 }
 0x149   :  { %187 = vsyncpa [#allocation5], 1 }
 0x14a   :  { %188 = vsyncpa [#allocation8], 1 }
 0x14b   :  { %189 = vsyncpa [#allocation6], 1 }

</bundles_post_ra>
